<compile_context>
chip_gen: v5e
topology: v5e:2x2
jax: 0.10.0
libtpu: 0.0.40
codegen_flags: <defaults>
</compile_context>

<pallas_src>
import jax
import jax.numpy as jnp
from jax.experimental import pallas as pl
from jax.experimental.pallas import tpu as pltpu

EPS = 1e-5
NEG_SLOPE = 0.2
LANE = 128


def _round_up(x, m):
    return (x + m - 1) // m * m


def _leaky(y):
    return jnp.where(y >= 0, y, NEG_SLOPE * y)


def _bn(acc, gamma, beta, inv_rows):
    """Training-mode BatchNorm (biased variance, eps=1e-5), two-pass variance,
    applied as a fused scale/shift.  acc: (B, tn) f32; gamma/beta: (1, tn)."""
    mean = jnp.sum(acc, axis=0, keepdims=True) * inv_rows
    centered = acc - mean
    var = jnp.sum(centered * centered, axis=0, keepdims=True) * inv_rows
    return centered * (gamma * jax.lax.rsqrt(var + EPS)) + beta


# --------------------------------------------------------------------------
# Generation- / shape-aware VMEM sizing.
# --------------------------------------------------------------------------
def _vmem_caps():
    """Returns (vmem_limit_bytes for CompilerParams, tile-sizing budget)."""
    cap = 64 * 1024 * 1024                       # conservative default (v7x)
    try:
        info = pltpu.get_tpu_info()
        cap = int(getattr(info, "vmem_capacity_bytes", cap)) or cap
    except Exception:
        pass
    # Leave headroom for Mosaic internal scratch / metadata / semaphores.
    limit = max(32 << 20, min(int(cap * 0.80), cap - (8 << 20)))
    budget = int(limit * 0.85)
    return limit, budget


def _fused_vmem_bytes(B, dp, tn, s_c, s_o):
    act = 2 * B * dp * s_c        # resident activations (double-buffer bound)
    hbuf = B * dp * s_c           # stage-1 intermediate (VMEM scratch)
    wts = 2 * dp * tn * s_c       # streamed weight tile (double-buffered)
    outb = 2 * B * tn * s_o
    gb = 2 * 8 * tn * 4
    temps = 4 * B * tn * 4        # f32 epilogue temporaries
    return act + hbuf + wts + outb + gb + temps


def _staged_vmem_bytes(B, dp, tn, tk, s_c, s_o, s_x):
    act = 2 * B * tk * s_c
    wts = 2 * tk * tn * s_c
    res = 2 * B * tn * s_x
    outb = 2 * B * tn * s_o
    acc = B * tn * 4
    gb = 2 * 8 * tn * 4
    temps = 3 * B * tn * 4
    return act + wts + res + outb + acc + gb + temps


def _pick_fused_tile(B, dp, s_c, s_o, budget):
    best = None
    for t in range(LANE, min(dp, 512) + 1, LANE):
        if dp % t == 0 and _fused_vmem_bytes(B, dp, t, s_c, s_o) <= budget:
            best = t
    return best


def _pick_staged_tiles(B, dp, s_c, s_o, s_x, budget):
    tn_cands = [t for t in range(min(dp, 512), 0, -LANE) if dp % t == 0]
    tk_cands = [t for t in range(dp, 0, -LANE) if dp % t == 0]
    # Preferred: tk = dp -> the activation block index (0, k) is constant, so
    # Pallas fetches x (or h) once per call -- no re-streaming.
    for tn in tn_cands:
        if _staged_vmem_bytes(B, dp, tn, dp, s_c, s_o, s_x) <= budget:
            return tn, dp
    # Otherwise maximize tn first (activation re-stream traffic ~ dp/tn).
    for tn in tn_cands:
        for tk in tk_cands:
            if tk == dp:
                continue
            if _staged_vmem_bytes(B, dp, tn, tk, s_c, s_o, s_x) <= budget:
                return tn, tk
    # TODO(synk): batch-tiled BN statistics for very large B (see header).
    return tn_cands[-1], tk_cands[-1]


# --------------------------------------------------------------------------
# Fused single-call kernel (both Linear+BN stages in one pallas_call).
# --------------------------------------------------------------------------
def _make_fused_kernel(*, tn, inv_rows, apply_final_act):
    def kernel(x_ref, w_ref, gb_ref, o_ref, h_ref):
        s = pl.program_id(0)                  # 0: stage 1, 1: stage 2
        n = pl.program_id(1)                  # output-feature tile
        col = pl.multiple_of(n * tn, LANE)
        gb = gb_ref[...].astype(jnp.float32)  # (2, tn): gamma row 0, beta row 1
        gamma, beta = gb[0:1, :], gb[1:2, :]

        @pl.when(s == 0)
        def _stage1():
            # h_tile = LeakyReLU(BN(x @ W1[:, tile])); kept in VMEM scratch.
            acc = jnp.dot(x_ref[...], w_ref[...],
                          preferred_element_type=jnp.float32)
            y = _bn(acc, gamma, beta, inv_rows)
            h_ref[:, pl.ds(col, tn)] = _leaky(y).astype(h_ref.dtype)

        @pl.when(s == 1)
        def _stage2():
            # y_tile = LeakyReLU?(BN(h @ W2[:, tile]) + x[:, tile])
            acc = jnp.dot(h_ref[...], w_ref[...],
                          preferred_element_type=jnp.float32)
            y = _bn(acc, gamma, beta, inv_rows)
            y = y + x_ref[:, pl.ds(col, tn)].astype(jnp.float32)
            if apply_final_act:
                y = _leaky(y)
            o_ref[...] = y.astype(o_ref.dtype)

    return kernel


def _fused_forward(xc, w, gb, tn, out_dtype, if_activate, vmem_limit):
    B, dp = xc.shape
    kernel = _make_fused_kernel(tn=tn, inv_rows=1.0 / B,
                                apply_final_act=if_activate)
    return pl.pallas_call(
        kernel,
        out_shape=jax.ShapeDtypeStruct((B, dp), out_dtype),
        grid_spec=pltpu.PrefetchScalarGridSpec(
            num_scalar_prefetch=0,
            grid=(2, dp // tn),                       # (stage, feature tile)
            in_specs=[
                pl.BlockSpec((B, dp), lambda s, n: (0, 0)),            # x resident
                pl.BlockSpec((None, dp, tn), lambda s, n: (s, 0, n)),  # W_s tile
                pl.BlockSpec((None, 2, tn), lambda s, n: (s, 0, n)),   # gamma/beta
            ],
            # (0, s*n): during stage 0 the output block index never changes, so
            # no stale writebacks are emitted before stage 1 fills each tile.
            out_specs=pl.BlockSpec((B, tn), lambda s, n: (0, s * n)),
            scratch_shapes=[pltpu.VMEM((B, dp), xc.dtype)],  # h stays on-chip
        ),
        compiler_params=pltpu.CompilerParams(
            # Stage 2 consumes every stage-1 tile through the VMEM h scratch,
            # so the grid must run sequentially on one core (no megacore split
            # for the fused path; the staged fallback keeps N "parallel").
            dimension_semantics=("arbitrary", "arbitrary"),
            vmem_limit_bytes=vmem_limit),
    )(xc, w, gb)


# --------------------------------------------------------------------------
# Fallback: two pallas_calls with a K-tiled f32 accumulator.
# --------------------------------------------------------------------------
def _make_staged_kernel(*, inv_rows, apply_act, with_residual):
    def kernel(*refs):
        if with_residual:
            x_ref, w_ref, gb_ref, res_ref, o_ref, acc_ref = refs
        else:
            x_ref, w_ref, gb_ref, o_ref, acc_ref = refs
            res_ref = None
        k = pl.program_id(1)

        @pl.when(k == 0)
        def _init():
            acc_ref[...] = jnp.zeros_like(acc_ref)

        acc_ref[...] += jnp.dot(x_ref[...], w_ref[...],
                                preferred_element_type=jnp.float32)

        @pl.when(k == pl.num_programs(1) - 1)
        def _epilogue():
            gb = gb_ref[...].astype(jnp.float32)
            y = _bn(acc_ref[...], gb[0:1, :], gb[1:2, :], inv_rows)
            if with_residual:
                y = y + res_ref[...].astype(jnp.float32)
            if apply_act:
                y = _leaky(y)
            o_ref[...] = y.astype(o_ref.dtype)

    return kernel


def _staged_forward(xc, xp, w, gb, out_dtype, if_activate, vmem_limit, budget):
    B, dp = xc.shape
    cdt = xc.dtype
    s_c = jnp.dtype(cdt).itemsize
    s_o = jnp.dtype(out_dtype).itemsize
    s_x = jnp.dtype(xp.dtype).itemsize
    tn, tk = _pick_staged_tiles(B, dp, s_c, s_o, s_x, budget)
    grid = (dp // tn, dp // tk)
    inv_rows = 1.0 / B

    cparams = pltpu.CompilerParams(
        dimension_semantics=("parallel", "arbitrary"),
        vmem_limit_bytes=vmem_limit)

    act_spec = pl.BlockSpec((B, tk), lambda n, k: (0, k))
    res_spec = pl.BlockSpec((B, tn), lambda n, k: (0, n))
    out_spec = pl.BlockSpec((B, tn), lambda n, k: (0, n))
    scratch = [pltpu.VMEM((B, tn), jnp.float32)]

    def w_spec(stage):
        return pl.BlockSpec((None, tk, tn), lambda n, k: (stage, k, n))

    def gb_spec(stage):
        return pl.BlockSpec((None, 2, tn), lambda n, k: (stage, 0, n))

    # stage 1: h = LeakyReLU(BN(x @ W1)), kept in the compute dtype.
    h = pl.pallas_call(
        _make_staged_kernel(inv_rows=inv_rows, apply_act=True,
                            with_residual=False),
        out_shape=jax.ShapeDtypeStruct((B, dp), cdt),
        grid_spec=pltpu.PrefetchScalarGridSpec(
            num_scalar_prefetch=0, grid=grid,
            in_specs=[act_spec, w_spec(0), gb_spec(0)],
            out_specs=out_spec, scratch_shapes=scratch),
        compiler_params=cparams,
    )(xc, w, gb)

    # stage 2: y = LeakyReLU?(BN(h @ W2) + x)
    return pl.pallas_call(
        _make_staged_kernel(inv_rows=inv_rows, apply_act=if_activate,
                            with_residual=True),
        out_shape=jax.ShapeDtypeStruct((B, dp), out_dtype),
        grid_spec=pltpu.PrefetchScalarGridSpec(
            num_scalar_prefetch=0, grid=grid,
            in_specs=[act_spec, w_spec(1), gb_spec(1), res_spec],
            out_specs=out_spec, scratch_shapes=scratch),
        compiler_params=cparams,
    )(h, w, gb, xp)


# --------------------------------------------------------------------------
# Public API.
# --------------------------------------------------------------------------
def prepare_params(w1, b1, g1, be1, w2, b2, g2, be2, *,
                   compute_dtype=jnp.bfloat16):
    """One-time parameter preparation (hoisted out of the per-step forward).

    - Pads the feature axis to a multiple of 128 (lane-dense tiles).
    - Casts weights to the matmul compute dtype (bf16 by default; MXU f32
      accumulation is used in the kernels, and BN renormalizes immediately).
    - Stacks W1/W2 and (gamma, beta) per stage so one grid axis / one index
      selects the stage.
    - b1/b2 are accepted for API parity with nn.Linear but dropped: under
      training-mode BatchNorm the per-feature bias is exactly cancelled by the
      batch-mean subtraction.
    """
    del b1, b2
    d_in, d_out = w1.shape
    assert d_in == d_out == w2.shape[0] == w2.shape[1], \
        "shortcut=None requires in_dims == out_dims"
    dp = _round_up(d_out, LANE)
    pad = dp - d_out
    w = jnp.stack([jnp.pad(w1, ((0, pad), (0, pad))),
                   jnp.pad(w2, ((0, pad), (0, pad)))]).astype(compute_dtype)
    gb = jnp.stack([
        jnp.stack([jnp.pad(g1, (0, pad)), jnp.pad(be1, (0, pad))]),
        jnp.stack([jnp.pad(g2, (0, pad)), jnp.pad(be2, (0, pad))]),
    ]).astype(jnp.float32)                       # (2 stages, {gamma,beta}, dp)
    return {"w": w, "gb": gb, "d_out": d_out, "dp": dp,
            "compute_dtype": compute_dtype}


def basic_block(x, params, *, if_activate=True, force_path=None):
    """Forward pass of BasicBlock (shortcut=None => identity residual)."""
    B, d_in = x.shape
    d_out, dp = params["d_out"], params["dp"]
    assert d_in == d_out, "shortcut=None requires in_dims == out_dims"
    w, gb = params["w"], params["gb"]
    cdt = params["compute_dtype"]
    out_dtype = x.dtype
    pad = dp - d_out

    xp = jnp.pad(x, ((0, 0), (0, pad)))      # residual (original precision)
    xc = xp.astype(cdt)                      # matmul operand (compute dtype)

    s_c = jnp.dtype(cdt).itemsize
    s_o = jnp.dtype(out_dtype).itemsize
    vmem_limit, budget = _vmem_caps()

    tn_fused = _pick_fused_tile(B, dp, s_c, s_o, budget)
    if force_path == "fused" and tn_fused is None:
        raise ValueError("fused path does not fit the VMEM budget")
    use_fused = tn_fused is not None and force_path != "staged"

    if use_fused:
        # Note: the fused path also uses the compute-dtype copy of x for the
        # residual add (saves a second resident copy of x in VMEM).
        y = _fused_forward(xc, w, gb, tn_fused, out_dtype, if_activate,
                           vmem_limit)
    else:
        y = _staged_forward(xc, xp, w, gb, out_dtype, if_activate,
                            vmem_limit, budget)
    return y[:, :d_out]


if __name__ == "__main__":
    key = jax.random.PRNGKey(0)
    B, D = 16, 32     # small demo: batch (multiple of 8), in_dims == out_dims
    ks = jax.random.split(key, 9)
    x = jax.random.normal(ks[0], (B, D), dtype=jnp.float32)

    bound = 1.0 / jnp.sqrt(jnp.float32(D))
    w1 = jax.random.uniform(ks[1], (D, D), minval=-bound, maxval=bound)
    b1 = jax.random.uniform(ks[2], (D,), minval=-bound, maxval=bound)
    w2 = jax.random.uniform(ks[3], (D, D), minval=-bound, maxval=bound)
    b2 = jax.random.uniform(ks[4], (D,), minval=-bound, maxval=bound)
    g1 = jax.random.uniform(ks[5], (D,), minval=0.5, maxval=1.5)
    be1 = 0.1 * jax.random.normal(ks[6], (D,))
    g2 = jax.random.uniform(ks[7], (D,), minval=0.5, maxval=1.5)
    be2 = 0.1 * jax.random.normal(ks[8], (D,))

    # Pure-JAX reference of the PyTorch forward (with biases, two-pass var).
    h = x @ w1 + b1
    m = h.mean(0); v = ((h - m) ** 2).mean(0)
    h = (h - m) / jnp.sqrt(v + EPS) * g1 + be1
    h = jnp.where(h >= 0, h, NEG_SLOPE * h)
    z = h @ w2 + b2
    m = z.mean(0); v = ((z - m) ** 2).mean(0)
    z = (z - m) / jnp.sqrt(v + EPS) * g2 + be2
    ref = z + x
    ref = jnp.where(ref >= 0, ref, NEG_SLOPE * ref)

    # (1) exact-math check: f32 compute dtype, fused single-call path.
    p_f32 = prepare_params(w1, b1, g1, be1, w2, b2, g2, be2,
                           compute_dtype=jnp.float32)
    y_fused = jax.block_until_ready(basic_block(x, p_f32))
    assert jnp.allclose(y_fused, ref, atol=5e-4, rtol=5e-4), "fused f32 mismatch"

    # (2) exercise the two-call K-tiled fallback path (same f32 math).
    y_staged = jax.block_until_ready(basic_block(x, p_f32, force_path="staged"))
    assert jnp.allclose(y_staged, ref, atol=5e-4, rtol=5e-4), "staged f32 mismatch"

    # (3) production default: bf16 matmul operands with f32 MXU accumulation
    #     (loose tolerance appropriate for bf16 operand rounding).
    p_bf16 = prepare_params(w1, b1, g1, be1, w2, b2, g2, be2)
    y_bf16 = jax.block_until_ready(basic_block(x, p_bf16))
    assert jnp.allclose(y_bf16, ref, atol=1e-1, rtol=1e-1), "bf16 path mismatch"

    print("KERNEL_OK")
</pallas_src>

<mosaic_0001>
module attributes {stable_mosaic.version = 11 : i64} {
  func.func @kernel(%arg0: i32, %arg1: i32, %arg2: memref<16x128xf32, #tpu.memory_space<vmem>>, %arg3: memref<1x128x128xf32, #tpu.memory_space<vmem>>, %arg4: memref<1x2x128xf32, #tpu.memory_space<vmem>>, %arg5: memref<16x128xf32, #tpu.memory_space<vmem>>, %arg6: memref<16x128xf32, #tpu.memory_space<vmem>>) attributes {dimension_semantics = [#tpu.dimension_semantics<arbitrary>, #tpu.dimension_semantics<arbitrary>], iteration_bounds = array<i64: 2, 1>, scalar_prefetch = 0 : i64, scratch_operands = 1 : i64, tpu.core_type = #tpu.core_type<tc>, window_params = [{pipeline_mode = #tpu.pipeline_mode<synchronous>, transform_indices = @transform_0, window_bounds = array<i64: 16, 128>}, {transform_indices = @transform_1, window_bounds = array<i64: 1, 128, 128>}, {transform_indices = @transform_2, window_bounds = array<i64: 1, 2, 128>}, {transform_indices = @transform_3, window_bounds = array<i64: 16, 128>}]} {
    %c128_i32 = arith.constant 128 : i32
    %0 = arith.muli %arg1, %c128_i32 : i32
    %1 = tpu.assume_multiple %0, 128 : i32
    %c0 = arith.constant 0 : index
    %c0_0 = arith.constant 0 : index
    %c0_1 = arith.constant 0 : index
    %2 = vector.load %arg4[%c0, %c0_0, %c0_1] : memref<1x2x128xf32, #tpu.memory_space<vmem>>, vector<1x2x128xf32>
    %3 = vector.shape_cast %2 : vector<1x2x128xf32> to vector<2x128xf32>
    %4 = vector.extract_strided_slice %3 {offsets = [0, 0], sizes = [1, 128], strides = [1, 1]} : vector<2x128xf32> to vector<1x128xf32>
    %5 = vector.extract_strided_slice %3 {offsets = [1, 0], sizes = [1, 128], strides = [1, 1]} : vector<2x128xf32> to vector<1x128xf32>
    %c0_i32 = arith.constant 0 : i32
    %6 = arith.cmpi eq, %arg0, %c0_i32 : i32
    %7 = arith.extui %6 : i1 to i32
    %c0_i32_2 = arith.constant 0 : i32
    %8 = arith.cmpi ne, %7, %c0_i32_2 : i32
    scf.if %8 {
      %c0_4 = arith.constant 0 : index
      %c0_5 = arith.constant 0 : index
      %12 = vector.load %arg2[%c0_4, %c0_5] : memref<16x128xf32, #tpu.memory_space<vmem>>, vector<16x128xf32>
      %c0_6 = arith.constant 0 : index
      %c0_7 = arith.constant 0 : index
      %c0_8 = arith.constant 0 : index
      %13 = vector.load %arg3[%c0_6, %c0_7, %c0_8] : memref<1x128x128xf32, #tpu.memory_space<vmem>>, vector<1x128x128xf32>
      %14 = vector.shape_cast %13 : vector<1x128x128xf32> to vector<128x128xf32>
      %cst = arith.constant dense<0.000000e+00> : vector<16x128xf32>
      %15 = tpu.matmul %12, %14, %cst {dimension_numbers = #tpu.dot_dimension_numbers<[1], [0], [0], [1], [0, 0, 1, 1], [], []>} : vector<16x128xf32>, vector<128x128xf32>, vector<16x128xf32> -> vector<16x128xf32>
      %cst_9 = arith.constant dense<0.000000e+00> : vector<128xf32>
      %16 = vector.multi_reduction <add>, %15, %cst_9 [0] : vector<16x128xf32> to vector<128xf32>
      %17 = vector.shape_cast %16 : vector<128xf32> to vector<1x128xf32>
      %cst_10 = arith.constant 6.250000e-02 : f32
      %18 = vector.broadcast %cst_10 : f32 to vector<1x128xf32>
      %19 = arith.mulf %17, %18 : vector<1x128xf32>
      %20 = vector.broadcast %19 : vector<1x128xf32> to vector<16x128xf32>
      %21 = arith.subf %15, %20 : vector<16x128xf32>
      %22 = arith.mulf %21, %21 : vector<16x128xf32>
      %cst_11 = arith.constant dense<0.000000e+00> : vector<128xf32>
      %23 = vector.multi_reduction <add>, %22, %cst_11 [0] : vector<16x128xf32> to vector<128xf32>
      %24 = vector.shape_cast %23 : vector<128xf32> to vector<1x128xf32>
      %cst_12 = arith.constant 6.250000e-02 : f32
      %25 = vector.broadcast %cst_12 : f32 to vector<1x128xf32>
      %26 = arith.mulf %24, %25 : vector<1x128xf32>
      %cst_13 = arith.constant 9.99999974E-6 : f32
      %27 = vector.broadcast %cst_13 : f32 to vector<1x128xf32>
      %28 = arith.addf %26, %27 : vector<1x128xf32>
      %29 = math.rsqrt %28 : vector<1x128xf32>
      %30 = arith.mulf %4, %29 : vector<1x128xf32>
      %31 = vector.broadcast %30 : vector<1x128xf32> to vector<16x128xf32>
      %32 = arith.mulf %21, %31 : vector<16x128xf32>
      %33 = vector.broadcast %5 : vector<1x128xf32> to vector<16x128xf32>
      %34 = arith.addf %32, %33 : vector<16x128xf32>
      %cst_14 = arith.constant 0.000000e+00 : f32
      %35 = vector.broadcast %cst_14 : f32 to vector<16x128xf32>
      %36 = arith.cmpf oge, %34, %35 : vector<16x128xf32>
      %cst_15 = arith.constant 2.000000e-01 : f32
      %37 = vector.broadcast %cst_15 : f32 to vector<16x128xf32>
      %38 = arith.mulf %37, %34 : vector<16x128xf32>
      %39 = arith.select %36, %34, %38 : vector<16x128xi1>, vector<16x128xf32>
      %c0_16 = arith.constant 0 : index
      %40 = arith.index_cast %1 : i32 to index
      %41 = vector.load %arg6[%c0_16, %40] : memref<16x128xf32, #tpu.memory_space<vmem>>, vector<16x128xf32>
      tpu.vector_store %arg6[%c0_16, %40], %39 {strides = array<i32>} : memref<16x128xf32, #tpu.memory_space<vmem>>, vector<16x128xf32>,
    } else {
    }
    %c1_i32 = arith.constant 1 : i32
    %9 = arith.cmpi eq, %arg0, %c1_i32 : i32
    %10 = arith.extui %9 : i1 to i32
    %c0_i32_3 = arith.constant 0 : i32
    %11 = arith.cmpi ne, %10, %c0_i32_3 : i32
    scf.if %11 {
      %c0_4 = arith.constant 0 : index
      %c0_5 = arith.constant 0 : index
      %12 = vector.load %arg6[%c0_4, %c0_5] : memref<16x128xf32, #tpu.memory_space<vmem>>, vector<16x128xf32>
      %c0_6 = arith.constant 0 : index
      %c0_7 = arith.constant 0 : index
      %c0_8 = arith.constant 0 : index
      %13 = vector.load %arg3[%c0_6, %c0_7, %c0_8] : memref<1x128x128xf32, #tpu.memory_space<vmem>>, vector<1x128x128xf32>
      %14 = vector.shape_cast %13 : vector<1x128x128xf32> to vector<128x128xf32>
      %cst = arith.constant dense<0.000000e+00> : vector<16x128xf32>
      %15 = tpu.matmul %12, %14, %cst {dimension_numbers = #tpu.dot_dimension_numbers<[1], [0], [0], [1], [0, 0, 1, 1], [], []>} : vector<16x128xf32>, vector<128x128xf32>, vector<16x128xf32> -> vector<16x128xf32>
      %cst_9 = arith.constant dense<0.000000e+00> : vector<128xf32>
      %16 = vector.multi_reduction <add>, %15, %cst_9 [0] : vector<16x128xf32> to vector<128xf32>
      %17 = vector.shape_cast %16 : vector<128xf32> to vector<1x128xf32>
      %cst_10 = arith.constant 6.250000e-02 : f32
      %18 = vector.broadcast %cst_10 : f32 to vector<1x128xf32>
      %19 = arith.mulf %17, %18 : vector<1x128xf32>
      %20 = vector.broadcast %19 : vector<1x128xf32> to vector<16x128xf32>
      %21 = arith.subf %15, %20 : vector<16x128xf32>
      %22 = arith.mulf %21, %21 : vector<16x128xf32>
      %cst_11 = arith.constant dense<0.000000e+00> : vector<128xf32>
      %23 = vector.multi_reduction <add>, %22, %cst_11 [0] : vector<16x128xf32> to vector<128xf32>
      %24 = vector.shape_cast %23 : vector<128xf32> to vector<1x128xf32>
      %cst_12 = arith.constant 6.250000e-02 : f32
      %25 = vector.broadcast %cst_12 : f32 to vector<1x128xf32>
      %26 = arith.mulf %24, %25 : vector<1x128xf32>
      %cst_13 = arith.constant 9.99999974E-6 : f32
      %27 = vector.broadcast %cst_13 : f32 to vector<1x128xf32>
      %28 = arith.addf %26, %27 : vector<1x128xf32>
      %29 = math.rsqrt %28 : vector<1x128xf32>
      %30 = arith.mulf %4, %29 : vector<1x128xf32>
      %31 = vector.broadcast %30 : vector<1x128xf32> to vector<16x128xf32>
      %32 = arith.mulf %21, %31 : vector<16x128xf32>
      %33 = vector.broadcast %5 : vector<1x128xf32> to vector<16x128xf32>
      %34 = arith.addf %32, %33 : vector<16x128xf32>
      %c0_14 = arith.constant 0 : index
      %35 = arith.index_cast %1 : i32 to index
      %36 = vector.load %arg2[%c0_14, %35] : memref<16x128xf32, #tpu.memory_space<vmem>>, vector<16x128xf32>
      %37 = arith.addf %34, %36 : vector<16x128xf32>
      %cst_15 = arith.constant 0.000000e+00 : f32
      %38 = vector.broadcast %cst_15 : f32 to vector<16x128xf32>
      %39 = arith.cmpf oge, %37, %38 : vector<16x128xf32>
      %cst_16 = arith.constant 2.000000e-01 : f32
      %40 = vector.broadcast %cst_16 : f32 to vector<16x128xf32>
      %41 = arith.mulf %40, %37 : vector<16x128xf32>
      %42 = arith.select %39, %37, %41 : vector<16x128xi1>, vector<16x128xf32>
      %c0_17 = arith.constant 0 : index
      %c0_18 = arith.constant 0 : index
      %43 = vector.load %arg5[%c0_17, %c0_18] : memref<16x128xf32, #tpu.memory_space<vmem>>, vector<16x128xf32>
      tpu.vector_store %arg5[%c0_17, %c0_18], %42 {strides = array<i32>} : memref<16x128xf32, #tpu.memory_space<vmem>>, vector<16x128xf32>,
    } else {
    }
    return
  }
  func.func @transform_0(%arg0: i32, %arg1: i32) -> (i32, i32) {
    %c0_i32 = arith.constant 0 : i32
    %c0_i32_0 = arith.constant 0 : i32
    %c0_i32_1 = arith.constant 0 : i32
    return %c0_i32, %c0_i32_0 : i32, i32
  }
  func.func @transform_1(%arg0: i32, %arg1: i32) -> (i32, i32, i32) {
    %c0_i32 = arith.constant 0 : i32
    %c0_i32_0 = arith.constant 0 : i32
    return %arg0, %c0_i32, %arg1 : i32, i32, i32
  }
  func.func @transform_2(%arg0: i32, %arg1: i32) -> (i32, i32, i32) {
    %c0_i32 = arith.constant 0 : i32
    %c0_i32_0 = arith.constant 0 : i32
    return %arg0, %c0_i32, %arg1 : i32, i32, i32
  }
  func.func @transform_3(%arg0: i32, %arg1: i32) -> (i32, i32) {
    %0 = arith.muli %arg0, %arg1 : i32
    %c0_i32 = arith.constant 0 : i32
    %c0_i32_0 = arith.constant 0 : i32
    return %c0_i32, %0 : i32, i32
  }
}

</mosaic_0001>

<bundles_post_ra>
// kernel: tpu_custom_call.1
= control target key start
LH: loop header
LB: loop body
LE: loop exit
PB: predicated region body
PF: predicated region fallthrough
CT: control target
= control target key end

     0   :  { %8 = vsyncpa [#allocation4], 0  ;;  %s1115_s0 = inlined_call_operand.hbm [shape: f32[16,128], index: 0, kind: input, shape index: {}]   ;;  %s1116_s1 = inlined_call_operand.hbm [shape: f32[2,128,128], index: 1, kind: input, shape index: {}]   ;;  %s1117_s2 = inlined_call_operand.hbm [shape: f32[2,2,128], index: 2, kind: input, shape index: {}]   ;;  %s1118_s3 = inlined_call_operand.hbm [shape: f32[16,128], index: 3, kind: output, shape index: {}]  }
   0x1   :  { %9 = vsyncpa [#allocation7], 0 }
   0x2   :  { %11 = vsyncpa [#allocation7 + $0x1], 0 }
   0x3   :  { %12 = vsyncpa [#allocation5], 0 }
   0x4   :  { %14 = vsyncpa [#allocation5 + $0x1], 0  ;;  %s941_s12 = smov 0   ;;  %s943_s13 = smov 0  }
   0x5   :  { %s945_s14 = smov 0   ;;  %s947_s15 = smov 0  }
   0x6   :  { %s949_s16 = smov 0   ;;  %s951_s17 = smov 0  }
   0x7 LB: > { %s594_s18 = sadd.s32 4294967294, %s913_s17   ;;  %s32_s19 = sadd.s32 1, %s909_s16  ;;  %s913_s17 = sphi %s951_s17, %s20_s17   ;;  %s909_s16 = sphi %s949_s16, %s1127_s16   ;;  %s905_s15 = sphi %s947_s15, %s1126_s15   ;;  %s901_s14 = sphi %s945_s14, %s1125_s14   ;;  %s897_s13 = sphi %s943_s13, %s1124_s13   ;;  %s893_s12 = sphi %s941_s12, %s1123_s12  }
   0x8   : > { %p34_p0 = scmp.ge.s32.totalorder %s32_s19, 2  ;;  %s62_s20 = sadd.s32 1, %s901_s14 }
   0x9   : > { %p69_p1 = scmp.ne.s32.totalorder %s901_s14, %s897_s13  ;;  %p70_p2 = scmp.eq.s32.totalorder %s913_s17, 0 }
   0xa   : > { %s1129_s19 = smov (%p34_p0, %s32_s19), 0  ;;  %p597_p5 = scmp.ge.s32.totalorder %s913_s17, 2 }
   0xb   : > { %p979_p3 = por %p70_p2, %p69_p1  ;;  %s57_s22 = ssub.s32 %s909_s16, %s1129_s19 }
   0xc   : > { %p60_p4 = scmp.eq.s32.totalorder %s57_s22, 0  ;;  %p674_p6 = scmp.lt.s32.totalorder %s913_s17, 2 }
   0xd   : > { %s169_s23 = sand.u32 1, %s913_s17   ;;  %s171_s25 = sand.u32 1, %s901_s14  }
   0xe   : > { %s989_s24 = scalar_select %p60_p4, %s901_s14, %s62_s20  }
   0xf   : > { %s598_s26 = sshll.u32 %s171_s25, 7  ;;  %s613_s27 = sshll.u32 %s909_s16, 7 }
  0x10   : > { %s179_s30 = scalar_lea.hbm %s1116_s1, %s613_s27  ;;  %s173_s5 = scalar_lea.vmem [#allocation6], %s598_s26 }
  0x11   : > { %s180_s4 = sshll.u32 %s179_s30, 4  ;;  %s182_s6 = sshll.u32 %s173_s5, 4  ;;  %s181_s4 = int_to_ptr.hbm [resolvable:$true] %s180_s4  ;;  %s183_s6 = int_to_ptr.vmem [resolvable:$true] %s182_s6 }
  0x12   : > { %p998_p7 = pnand %p674_p6, %p979_p3  ;;  %s170_s8 = scalar_lea.sflag [#allocation7], %s169_s23 }
  0x13   : > { %s915_s9 = smov 128   ;;  %s916_s10 = smov 8  }
  0x14   : > { %665 = dma.hbm_to_vmem [thread:$0]  (!%p998_p7), %s181_s4, 2048, %s183_s6, %s170_s8, %s915_s9, %s915_s9, %s916_s10  }
  0x15   : > { %s1005_s11 = sadd.s32 4294967295, %s913_s17   ;;  %p75_p8 = scmp.ne.s32.totalorder %s897_s13, %s893_s12 }
  0x16   : > { %p76_p9 = scmp.eq.s32.totalorder %s1005_s11, 0  ;;  %p595_p10 = scmp.ge.s32.totalorder %s913_s17, 1 }
  0x17   : > { %p142_p11 = scmp.lt.s32.totalorder %s913_s17, 3  ;;  %s153_s23 = sshll.u32 %s1115_s0, 4  ;;  %s154_s23 = int_to_ptr.hbm [resolvable:$true] %s153_s23 }
  0x18   : > { %p1014_p12 = por %p76_p9, %p75_p8  ;;  %s601_s12 = sshll.u32 %s171_s25, 1 }
  0x19   : > { %p1021_p13 = pnand %p595_p10, %p142_p11  ;;  %s917_s27 = smov [#allocation3]  }
  0x1a   : > { %s155_s28 = sshll.u32 %s917_s27, 4  ;;  %s602_s29 = sshll.u32 %s909_s16, 1  ;;  %s156_s28 = int_to_ptr.vmem [resolvable:$true] %s155_s28 }
  0x1b   : > { %p658_p0 = pneg %p1021_p13  ;;  %s201_s5 = scalar_lea.hbm %s1117_s2, %s602_s29 }
  0x1c   : > { %s196_s6 = scalar_lea.vmem [#allocation8], %s601_s12  ;;  %s203_s22 = sshll.u32 %s201_s5, 4  ;;  %s204_s22 = int_to_ptr.hbm [resolvable:$true] %s203_s22 }
  0x1d   : > { %p659_p1 = pnand %p658_p0, %p76_p9  ;;  %s205_s21 = sshll.u32 %s196_s6, 4  ;;  %s206_s21 = int_to_ptr.vmem [resolvable:$true] %s205_s21 }
  0x1e   : > { %668 = dma.hbm_to_vmem [thread:$0]  (!%p998_p7), %s204_s22, 32, %s206_s21, %s170_s8  }
  0x1f   : > { %661 = dma.hbm_to_vmem [thread:$0]  (!%p659_p1), %s154_s23, 256, %s156_s28, [#allocation4], %s915_s9, %s915_s9, %s916_s10  }
  0x20   : > { %214 = sbr.rel (%p1021_p13) target bundleno = 516 (0x204), region = 32 }
  0x25   : > { %880 = dma.done.wait (%p76_p9), [#allocation4], 256  }
  0x26   : > { %882 = vsyncadd (%p76_p9), [#allocation4], 4294967040  ;;  %s221_s25 = sand.u32 1, %s1005_s11   ;;  %s223_s12 = sand.u32 1, %s897_s13  }
  0x27   : > { %s605_s27 = sshll.u32 %s223_s12, 7  ;;  %s222_s9 = scalar_lea.sflag [#allocation7], %s221_s25 }
  0x28   : > { %s1043_s10 = scalar_lea.vmem [#allocation6], %s605_s27 }
  0x29   : > { %884 = dma.done.wait (%p1014_p12), %s222_s9, 2080  }
  0x2a   : > { %886 = vsyncadd (%p1014_p12), %s222_s9, 4294965216  ;;  %s606_s7 = sshll.u32 %s223_s12, 1  ;;  %p607_p2 = scmp.ne.s32.totalorder %s905_s15, 0 }
  0x2b   : > { %s235_s8 = scalar_lea.vmem [#allocation8], %s606_s7 }
  0x2c   : > { %v1049_v0 = vld [vmem:[%s235_s8] sm:$0x3]  ;;  %270 = sbr.rel (%p607_p2) target bundleno = 276 (0x114), region = 48 }
  0x31   : > { %v288_v1 = vld [vmem:[%s1043_s10 + $0x78] sm:$0xff]  ;;  %v287_v2 = vld [vmem:[%s1043_s10 + $0x70] sm:$0xff]  ;;  %v286_v3 = vld [vmem:[%s1043_s10 + $0x68] sm:$0xff]  ;;  %v347_v51 = vperm.slane %v1049_v0, 1 }
  0x32   : > { %289 = vmatpush.msra.mxu0 %v288_v1  ;;  %614 = vmatpush.msra.mxu1 %v288_v1  ;;  %v285_v4 = vld [vmem:[%s1043_s10 + $0x60] sm:$0xff]  ;;  %v284_v5 = vld [vmem:[%s1043_s10 + $0x58] sm:$0xff]  ;;  %v283_v6 = vld [vmem:[%s1043_s10 + $0x50] sm:$0xff] }
  0x33   : > { %v282_v7 = vld [vmem:[%s1043_s10 + $0x48] sm:$0xff]  ;;  %v281_v8 = vld [vmem:[%s1043_s10 + $0x40] sm:$0xff]  ;;  %v280_v9 = vld [vmem:[%s1043_s10 + $0x38] sm:$0xff] }
  0x34   : > { %290 = vmatpush.msra.mxu0 %v287_v2  ;;  %615 = vmatpush.msra.mxu1 %v287_v2  ;;  %v279_v10 = vld [vmem:[%s1043_s10 + $0x30] sm:$0xff]  ;;  %v278_v11 = vld [vmem:[%s1043_s10 + $0x28] sm:$0xff]  ;;  %v277_v12 = vld [vmem:[%s1043_s10 + $0x20] sm:$0xff] }
  0x35   : > { %v276_v13 = vld [vmem:[%s1043_s10 + $0x18] sm:$0xff]  ;;  %v275_v14 = vld [vmem:[%s1043_s10 + $0x10] sm:$0xff]  ;;  %v274_v15 = vld [vmem:[%s1043_s10 + $0x8] sm:$0xff] }
  0x36   : > { %291 = vmatpush.msra.mxu0 %v286_v3  ;;  %616 = vmatpush.msra.mxu1 %v286_v3  ;;  %v273_v16 = vld [vmem:[%s1043_s10] sm:$0xff]  ;;  %v271_v17 = vld [vmem:[#allocation3] sm:$0xff]  ;;  %v272_v18 = vld [vmem:[#allocation3 + $0x8] sm:$0xff] }
  0x38   : > { %292 = vmatpush.msra.mxu0 %v285_v4  ;;  %617 = vmatpush.msra.mxu1 %v285_v4 }
  0x3a   : > { %293 = vmatpush.msra.mxu0 %v284_v5  ;;  %618 = vmatpush.msra.mxu1 %v284_v5 }
  0x3c   : > { %294 = vmatpush.msra.mxu0 %v283_v6  ;;  %619 = vmatpush.msra.mxu1 %v283_v6 }
  0x3e   : > { %295 = vmatpush.msra.mxu0 %v282_v7  ;;  %620 = vmatpush.msra.mxu1 %v282_v7 }
  0x40   : > { %296 = vmatpush.msra.mxu0 %v281_v8  ;;  %621 = vmatpush.msra.mxu1 %v281_v8 }
  0x42   : > { %297 = vmatpush.msra.mxu0 %v280_v9  ;;  %622 = vmatpush.msra.mxu1 %v280_v9 }
  0x44   : > { %298 = vmatpush.msra.mxu0 %v279_v10  ;;  %623 = vmatpush.msra.mxu1 %v279_v10 }
  0x46   : > { %299 = vmatpush.msra.mxu0 %v278_v11  ;;  %624 = vmatpush.msra.mxu1 %v278_v11 }
  0x48   : > { %300 = vmatpush.msra.mxu0 %v277_v12  ;;  %625 = vmatpush.msra.mxu1 %v277_v12 }
  0x4a   : > { %301 = vmatpush.msra.mxu0 %v276_v13  ;;  %626 = vmatpush.msra.mxu1 %v276_v13 }
  0x4c   : > { %302 = vmatpush.msra.mxu0 %v275_v14  ;;  %627 = vmatpush.msra.mxu1 %v275_v14 }
  0x4e   : > { %303 = vmatpush.msra.mxu0 %v274_v15  ;;  %628 = vmatpush.msra.mxu1 %v274_v15 }
  0x50   : > { %304 = vmatpush.msra.mxu0 %v273_v16  ;;  %629 = vmatpush.msra.mxu1 %v273_v16 }
  0x51   : > { %305 = vmatmul.f32.vlgmr.msra.gmra.mxu0 %v271_v17  ;;  %308 = vmatmul.f32.vlgmr.msra.gmra.mxu1 %v272_v18 }
  0xce   : > { %v306_v19 = vpop.f32.mrf.mxu0  ;;  %v309_v20 = vpop.f32.mrf.mxu1 }
  0xcf   : > { %v312_v21 = vadd.f32 %v309_v20, %v306_v19 }
  0xd1   : > { %v313_v22 = vrot.slane %v312_v21, 4 }
  0xd3   : > { %v314_v23 = vadd.f32 %v313_v22, %v312_v21 }
  0xd5   : > { %v315_v24 = vrot.slane %v314_v23, 2 }
  0xd7   : > { %v316_v25 = vadd.f32 %v315_v24, %v314_v23 }
  0xd9   : > { %v317_v26 = vrot.slane %v316_v25, 1 }
  0xdb   : > { %v318_v27 = vadd.f32 %v317_v26, %v316_v25 }
  0xdd   : > { %v319_v28 = vmul.f32 0.0625, %v318_v27 }
  0xdf   : > { %v320_v29 = vsub.f32 %v306_v19, %v319_v28  ;;  %v321_v30 = vsub.f32 %v309_v20, %v319_v28 }
  0xe1   : > { %v322_v31 = vmul.f32 %v320_v29, %v320_v29  ;;  %v323_v32 = vmul.f32 %v321_v30, %v321_v30 }
  0xe3   : > { %v324_v33 = vadd.f32 %v323_v32, %v322_v31 }
  0xe5   : > { %v325_v34 = vrot.slane %v324_v33, 4 }
  0xe7   : > { %v326_v35 = vadd.f32 %v325_v34, %v324_v33 }
  0xe9   : > { %v327_v36 = vrot.slane %v326_v35, 2 }
  0xeb   : > { %v328_v37 = vadd.f32 %v327_v36, %v326_v35 }
  0xed   : > { %v329_v38 = vrot.slane %v328_v37, 1 }
  0xef   : > { %v330_v39 = vadd.f32 %v329_v38, %v328_v37 }
  0xf1   : > { %v331_v40 = vmul.f32 0.0625, %v330_v39 }
  0xf3   : > { %v332_v41 = vadd.f32 1e-05, %v331_v40 }
  0xf5   : > { %733 = vrsqrt.f32 %v332_v41  ;;  %vm339_vm1 = vweird.f32 %v332_v41 }
  0xfb   : > { %v734_v42 = vpop.eup %733 }
  0xfc   : > { %v334_v43 = vmul.f32 %v734_v42, %v332_v41  ;;  %vm340_vm0 = vweird.f32 %v734_v42 }
  0xfd   : > { %vm341_vm2 = vmor %vm339_vm1, %vm340_vm0 }
  0xfe   : > { %v335_v44 = vmul.f32 %v734_v42, %v334_v43 }
 0x100   : > { %v336_v45 = vmul.f32 0.5, %v335_v44 }
 0x102   : > { %v337_v46 = vsub.f32 1.5, %v336_v45 }
 0x104   : > { %v338_v47 = vmul.f32 %v734_v42, %v337_v46 }
 0x106   : > { %v342_v48 = vsel %vm341_vm2, %v734_v42, %v338_v47 }
 0x107   : > { %v343_v49 = vmul.f32 %v342_v48, %v1049_v0 }
 0x109   : > { %v344_v50 = vperm.slane %v343_v49, 0 }
 0x10b   : > { %v345_v52 = vmul.f32 %v344_v50, %v320_v29  ;;  %v346_v53 = vmul.f32 %v344_v50, %v321_v30 }
 0x10d   : > { %v348_v54 = vadd.f32 %v347_v51, %v345_v52  ;;  %v349_v55 = vadd.f32 %v347_v51, %v346_v53 }
 0x10f   : > { %vm350_vm3 = vcmp.ge.f32.partialorder %v348_v54, 0.0  ;;  %vm351_vm4 = vcmp.ge.f32.partialorder %v349_v55, 0.0  ;;  %v352_v56 = vmul.f32 0.2, %v348_v54  ;;  %v353_v57 = vmul.f32 0.2, %v349_v55 }
 0x111   : > { %v354_v58 = vsel %vm350_vm3, %v348_v54, %v352_v56  ;;  %v355_v59 = vsel %vm351_vm4, %v349_v55, %v353_v57 }
 0x112   : > { %359 = vst [vmem:[#allocation2] sm:$0xff] %v354_v58 }
 0x113   : > { %360 = vst [vmem:[#allocation2 + $0x8] sm:$0xff] %v355_v59 }
 0x114 PF: > { %p608_p3 = scmp.ne.s32.totalorder %s905_s15, 1 }
 0x116   : > { %364 = sbr.rel (%p608_p3) target bundleno = 512 (0x200), region = 52 }
 0x11b   : > { %v382_v60 = vld [vmem:[%s1043_s10 + $0x78] sm:$0xff]  ;;  %v381_v61 = vld [vmem:[%s1043_s10 + $0x70] sm:$0xff]  ;;  %v380_v62 = vld [vmem:[%s1043_s10 + $0x68] sm:$0xff]  ;;  %v441_v47 = vperm.slane %v1049_v0, 1 }
 0x11c   : > { %383 = vmatpush.msra.mxu0 %v382_v60  ;;  %630 = vmatpush.msra.mxu1 %v382_v60  ;;  %v379_v63 = vld [vmem:[%s1043_s10 + $0x60] sm:$0xff]  ;;  %v378_v1 = vld [vmem:[%s1043_s10 + $0x58] sm:$0xff]  ;;  %v377_v2 = vld [vmem:[%s1043_s10 + $0x50] sm:$0xff] }
 0x11d   : > { %v376_v3 = vld [vmem:[%s1043_s10 + $0x48] sm:$0xff]  ;;  %v375_v4 = vld [vmem:[%s1043_s10 + $0x40] sm:$0xff]  ;;  %v374_v5 = vld [vmem:[%s1043_s10 + $0x38] sm:$0xff] }
 0x11e   : > { %384 = vmatpush.msra.mxu0 %v381_v61  ;;  %631 = vmatpush.msra.mxu1 %v381_v61  ;;  %v373_v6 = vld [vmem:[%s1043_s10 + $0x30] sm:$0xff]  ;;  %v372_v7 = vld [vmem:[%s1043_s10 + $0x28] sm:$0xff]  ;;  %v371_v8 = vld [vmem:[%s1043_s10 + $0x20] sm:$0xff] }
 0x11f   : > { %v370_v9 = vld [vmem:[%s1043_s10 + $0x18] sm:$0xff]  ;;  %v369_v10 = vld [vmem:[%s1043_s10 + $0x10] sm:$0xff]  ;;  %v368_v11 = vld [vmem:[%s1043_s10 + $0x8] sm:$0xff] }
 0x120   : > { %385 = vmatpush.msra.mxu0 %v380_v62  ;;  %632 = vmatpush.msra.mxu1 %v380_v62  ;;  %v367_v12 = vld [vmem:[%s1043_s10] sm:$0xff]  ;;  %v366_v14 = vld [vmem:[#allocation2 + $0x8] sm:$0xff]  ;;  %v447_v50 = vld [vmem:[#allocation3] sm:$0xff] }
 0x121   : > { %v365_v13 = vld [vmem:[#allocation2] sm:$0xff]  ;;  %v448_v51 = vld [vmem:[#allocation3 + $0x8] sm:$0xff] }
 0x122   : > { %386 = vmatpush.msra.mxu0 %v379_v63  ;;  %633 = vmatpush.msra.mxu1 %v379_v63 }
 0x124   : > { %387 = vmatpush.msra.mxu0 %v378_v1  ;;  %634 = vmatpush.msra.mxu1 %v378_v1 }
 0x126   : > { %388 = vmatpush.msra.mxu0 %v377_v2  ;;  %635 = vmatpush.msra.mxu1 %v377_v2 }
 0x128   : > { %389 = vmatpush.msra.mxu0 %v376_v3  ;;  %636 = vmatpush.msra.mxu1 %v376_v3 }
 0x12a   : > { %390 = vmatpush.msra.mxu0 %v375_v4  ;;  %637 = vmatpush.msra.mxu1 %v375_v4 }
 0x12c   : > { %391 = vmatpush.msra.mxu0 %v374_v5  ;;  %638 = vmatpush.msra.mxu1 %v374_v5 }
 0x12e   : > { %392 = vmatpush.msra.mxu0 %v373_v6  ;;  %639 = vmatpush.msra.mxu1 %v373_v6 }
 0x130   : > { %393 = vmatpush.msra.mxu0 %v372_v7  ;;  %640 = vmatpush.msra.mxu1 %v372_v7 }
 0x132   : > { %394 = vmatpush.msra.mxu0 %v371_v8  ;;  %641 = vmatpush.msra.mxu1 %v371_v8 }
 0x134   : > { %395 = vmatpush.msra.mxu0 %v370_v9  ;;  %642 = vmatpush.msra.mxu1 %v370_v9 }
 0x136   : > { %396 = vmatpush.msra.mxu0 %v369_v10  ;;  %643 = vmatpush.msra.mxu1 %v369_v10 }
 0x138   : > { %397 = vmatpush.msra.mxu0 %v368_v11  ;;  %644 = vmatpush.msra.mxu1 %v368_v11 }
 0x13a   : > { %398 = vmatpush.msra.mxu0 %v367_v12  ;;  %645 = vmatpush.msra.mxu1 %v367_v12 }
 0x13b   : > { %399 = vmatmul.f32.vlgmr.msra.gmra.mxu0 %v365_v13  ;;  %402 = vmatmul.f32.vlgmr.msra.gmra.mxu1 %v366_v14 }
 0x1b8   : > { %v400_v15 = vpop.f32.mrf.mxu0  ;;  %v403_v16 = vpop.f32.mrf.mxu1 }
 0x1b9   : > { %v406_v17 = vadd.f32 %v403_v16, %v400_v15 }
 0x1bb   : > { %v407_v18 = vrot.slane %v406_v17, 4 }
 0x1bd   : > { %v408_v19 = vadd.f32 %v407_v18, %v406_v17 }
 0x1bf   : > { %v409_v20 = vrot.slane %v408_v19, 2 }
 0x1c1   : > { %v410_v21 = vadd.f32 %v409_v20, %v408_v19 }
 0x1c3   : > { %v411_v22 = vrot.slane %v410_v21, 1 }
 0x1c5   : > { %v412_v23 = vadd.f32 %v411_v22, %v410_v21 }
 0x1c7   : > { %v413_v24 = vmul.f32 0.0625, %v412_v23 }
 0x1c9   : > { %v414_v25 = vsub.f32 %v400_v15, %v413_v24  ;;  %v415_v26 = vsub.f32 %v403_v16, %v413_v24 }
 0x1cb   : > { %v416_v27 = vmul.f32 %v414_v25, %v414_v25  ;;  %v417_v28 = vmul.f32 %v415_v26, %v415_v26 }
 0x1cd   : > { %v418_v29 = vadd.f32 %v417_v28, %v416_v27 }
 0x1cf   : > { %v419_v30 = vrot.slane %v418_v29, 4 }
 0x1d1   : > { %v420_v31 = vadd.f32 %v419_v30, %v418_v29 }
 0x1d3   : > { %v421_v32 = vrot.slane %v420_v31, 2 }
 0x1d5   : > { %v422_v33 = vadd.f32 %v421_v32, %v420_v31 }
 0x1d7   : > { %v423_v34 = vrot.slane %v422_v33, 1 }
 0x1d9   : > { %v424_v35 = vadd.f32 %v423_v34, %v422_v33 }
 0x1db   : > { %v425_v36 = vmul.f32 0.0625, %v424_v35 }
 0x1dd   : > { %v426_v37 = vadd.f32 1e-05, %v425_v36 }
 0x1df   : > { %735 = vrsqrt.f32 %v426_v37  ;;  %vm433_vm6 = vweird.f32 %v426_v37 }
 0x1e5   : > { %v736_v38 = vpop.eup %735 }
 0x1e6   : > { %v428_v39 = vmul.f32 %v736_v38, %v426_v37  ;;  %vm434_vm5 = vweird.f32 %v736_v38 }
 0x1e7   : > { %vm435_vm7 = vmor %vm433_vm6, %vm434_vm5 }
 0x1e8   : > { %v429_v40 = vmul.f32 %v736_v38, %v428_v39 }
 0x1ea   : > { %v430_v41 = vmul.f32 0.5, %v429_v40 }
 0x1ec   : > { %v431_v42 = vsub.f32 1.5, %v430_v41 }
 0x1ee   : > { %v432_v43 = vmul.f32 %v736_v38, %v431_v42 }
 0x1f0   : > { %v436_v44 = vsel %vm435_vm7, %v736_v38, %v432_v43 }
 0x1f1   : > { %v437_v45 = vmul.f32 %v436_v44, %v1049_v0 }
 0x1f3   : > { %v438_v46 = vperm.slane %v437_v45, 0 }
 0x1f5   : > { %v439_v48 = vmul.f32 %v438_v46, %v414_v25  ;;  %v440_v49 = vmul.f32 %v438_v46, %v415_v26 }
 0x1f7   : > { %v442_v52 = vadd.f32 %v441_v47, %v439_v48  ;;  %v443_v53 = vadd.f32 %v441_v47, %v440_v49 }
 0x1f9   : > { %v449_v54 = vadd.f32 %v447_v50, %v442_v52  ;;  %v450_v55 = vadd.f32 %v448_v51, %v443_v53 }
 0x1fb   : > { %vm451_vm8 = vcmp.ge.f32.partialorder %v449_v54, 0.0  ;;  %vm452_vm9 = vcmp.ge.f32.partialorder %v450_v55, 0.0  ;;  %v453_v56 = vmul.f32 0.2, %v449_v54  ;;  %v454_v57 = vmul.f32 0.2, %v450_v55 }
 0x1fd   : > { %v455_v58 = vsel %vm451_vm8, %v449_v54, %v453_v56  ;;  %v456_v59 = vsel %vm452_vm9, %v450_v55, %v454_v57 }
 0x1fe   : > { %457 = vst [vmem:[#allocation9] sm:$0xff] %v455_v58 }
 0x1ff   : > { %458 = vst [vmem:[#allocation9 + $0x8] sm:$0xff] %v456_v59 }
 0x200 PF: > { %p676_p4 = scmp.eq.s32.totalorder %s1005_s11, 1  ;;  %s474_s23 = sshll.u32 %s1118_s3, 4  ;;  %s475_s23 = int_to_ptr.hbm [resolvable:$true] %s474_s23 }
 0x201   : > { %s918_s26 = smov [#allocation9]   ;;  %s919_s29 = smov 128  }
 0x202   : > { %s472_s28 = sshll.u32 %s918_s26, 4  ;;  %s920_s30 = smov 8   ;;  %s473_s28 = int_to_ptr.vmem [resolvable:$true] %s472_s28 }
 0x203   : > { %655 = dma.vmem_to_hbm [thread:$0]  (%p676_p4), %s473_s28, 256, %s475_s23, [#allocation5], %s919_s29, %s919_s29, %s920_s30  }
 0x204 PF: > { %p678_p6 = scmp.eq.s32.totalorder %s594_s18, 1 }
 0x206   : > { %p670_p7 = pnand %p678_p6, %p597_p5 }
 0x208   : > { %p671_p8 = pneg %p670_p7 }
 0x20a   : > { %888 = dma.done.wait (%p671_p8), [#allocation5], 256  }
 0x20b   : > { %890 = vsyncadd (%p671_p8), [#allocation5], 4294967040  ;;  %s20_s17 = sadd.s32 1, %s913_s17   ;;  %s1123_s12 = smov %s897_s13 }
 0x20c   : > { %p17_p9 = scmp.ge.s32.totalorder %s20_s17, 4   ;;  %s1124_s13 = smov %s901_s14 }
 0x20d   : > { %s1125_s14 = smov %s989_s24  ;;  %s1126_s15 = smov %s909_s16 }
 0x20e   : > { %s1127_s16 = smov %s1129_s19  ;;  %19 = sbr.rel (!%p17_p9) target bundleno = 7 (0x7), region = 103 }
 0x213   :  { %496 = vsyncpa [#allocation4], 1 }
 0x214   :  { %498 = vsyncpa [#allocation4 + $0x1], 1 }
 0x215   :  { %499 = vsyncpa [#allocation7], 1 }
 0x216   :  { %501 = vsyncpa [#allocation7 + $0x1], 1 }
 0x217   :  { %502 = vsyncpa [#allocation5], 1 }
 0x218   :  { %504 = vsyncpa [#allocation5 + $0x1], 1 }

</bundles_post_ra>
